<compile_context>
chip_gen: v6e
topology: v6e:2x2x1
jax: 0.10.0
libtpu: 0.0.40
codegen_flags: <defaults>
</compile_context>

<pallas_src>
import functools

import jax
import jax.numpy as jnp
from jax import lax
from jax.experimental import pallas as pl
from jax.experimental.pallas import tpu as pltpu

MARGIN = 1.0          # self.margin == 1
P = 1                 # self.p == 1  -> no pow
SIZE_AVERAGE = True   # self.size_average
MAX_TILE_N = 1024     # rows per block (multiple of 8; fits v5e/v6e/v7x VMEM budgets)


def _hinge_loss_kernel(out_ref, y_ref, loss_ref, *, n_total, tile_n, margin, inv_n):
    # out_ref : (tile_n, C) caller dtype, VMEM
    # y_ref   : (tile_n, 1) int32, VMEM
    # loss_ref: (1, 1) float32, SMEM -- resident accumulator across the grid
    pid = pl.program_id(0)

    @pl.when(pid == 0)
    def _init():
        loss_ref[0, 0] = jnp.float32(0.0)

    scores = out_ref[...].astype(jnp.float32)                 # cast in-kernel
    labels = y_ref[...]                                       # (tile_n, 1) i32
    c = scores.shape[-1]

    col_ids = lax.broadcasted_iota(jnp.int32, (tile_n, c), 1)
    row_ids = lax.broadcasted_iota(jnp.int32, (tile_n, c), 0)

    # output_y = output[arange(N), y], kept as (tile_n, 1) for broadcasting
    is_true = col_ids == labels
    output_y = jnp.sum(jnp.where(is_true, scores, 0.0), axis=-1, keepdims=True)

    # relu(output - output_y + margin); the true class of every valid row
    # contributes exactly relu(margin), which is removed once per block below
    # (no per-element "zero the true class" select).
    hinge = jnp.maximum(scores - output_y + margin, 0.0)

    # Mask rows past the end of the batch (ragged last block). jnp.where is a
    # select, so garbage (even NaN) in the padded rows never propagates.
    n_valid = jnp.minimum(tile_n, n_total - pid * tile_n)
    hinge = jnp.where(row_ids < n_valid, hinge, 0.0)

    block_sum = jnp.sum(hinge) - max(margin, 0.0) * n_valid.astype(jnp.float32)
    # p == 1 -> no pow; weight is None -> no scaling
    loss_ref[0, 0] += block_sum

    @pl.when(pid == pl.num_programs(0) - 1)
    def _finalize():
        loss_ref[0, 0] = loss_ref[0, 0] * jnp.float32(inv_n)


def multiclass_hinge_loss(output, y, *, margin=MARGIN, size_average=SIZE_AVERAGE,
                          max_tile_n=MAX_TILE_N):
    n, c = output.shape
    y2d = y.reshape(n, 1).astype(jnp.int32)

    # Block second-to-last dim must be a multiple of 8 or equal to the full dim.
    tile_n = n if n <= max_tile_n else max_tile_n            # max_tile_n % 8 == 0
    num_blocks = pl.cdiv(n, tile_n)
    inv_n = (1.0 / n) if size_average else 1.0

    kernel = functools.partial(
        _hinge_loss_kernel, n_total=n, tile_n=tile_n,
        margin=float(margin), inv_n=float(inv_n))

    out = pl.pallas_call(
        kernel,
        out_shape=jax.ShapeDtypeStruct((1, 1), jnp.float32),
        grid=(num_blocks,),
        in_specs=[
            pl.BlockSpec((tile_n, c), lambda i: (i, 0)),      # scores, native dtype
            pl.BlockSpec((tile_n, 1), lambda i: (i, 0)),      # labels
        ],
        out_specs=pl.BlockSpec((1, 1), lambda i: (0, 0), memory_space=pltpu.SMEM),
        compiler_params=pltpu.CompilerParams(
            dimension_semantics=("arbitrary",)),              # resident accumulator
    )(output, y2d)
    return out[0, 0]


if __name__ == "__main__":
    key = jax.random.PRNGKey(0)
    k1, k2, k3, k4 = jax.random.split(key, 4)

    # reference: same math as the PyTorch forward
    def ref_loss(output, y, margin=MARGIN, size_average=SIZE_AVERAGE):
        nn_ = output.shape[0]
        out_y = output[jnp.arange(nn_), y][:, None]
        r = output - out_y + margin
        r = r.at[jnp.arange(nn_), y].set(0.0)
        r = jnp.maximum(r, 0.0)
        r = jnp.sum(r)
        if size_average:
            r = r / nn_
        return r

    # small case: single block (e.g. MNIST SVM head)
    N, C = 8, 10
    output = jax.random.normal(k1, (N, C), dtype=jnp.float32)
    y = jax.random.randint(k2, (N,), 0, C, dtype=jnp.int32)
    loss = multiclass_hinge_loss(output, y)
    jax.block_until_ready(loss)
    assert jnp.allclose(loss, ref_loss(output, y), rtol=1e-5, atol=1e-5), (
        loss, ref_loss(output, y))

    # tiled case: multi-block grid with a ragged last block (exercises the
    # resident SMEM accumulator + row-mask path)
    N2, C2 = 200, 10
    output2 = jax.random.normal(k3, (N2, C2), dtype=jnp.float32)
    y2 = jax.random.randint(k4, (N2,), 0, C2, dtype=jnp.int32)
    loss2 = multiclass_hinge_loss(output2, y2, max_tile_n=64)
    jax.block_until_ready(loss2)
    assert jnp.allclose(loss2, ref_loss(output2, y2), rtol=1e-5, atol=1e-5), (
        loss2, ref_loss(output2, y2))

    print("KERNEL_OK")
</pallas_src>

<mosaic_0001>
module attributes {stable_mosaic.version = 11 : i64} {
  func.func @_hinge_loss_kernel(%arg0: i32, %arg1: memref<8x10xf32, #tpu.memory_space<vmem>>, %arg2: memref<8x1xi32, #tpu.memory_space<vmem>>, %arg3: memref<1x1xf32, #tpu.memory_space<smem>>) attributes {dimension_semantics = [#tpu.dimension_semantics<arbitrary>], iteration_bounds = array<i64: 1>, scalar_prefetch = 0 : i64, scratch_operands = 0 : i64, tpu.core_type = #tpu.core_type<tc>, window_params = [{transform_indices = @transform_0, window_bounds = array<i64: 8, 10>}, {transform_indices = @transform_1, window_bounds = array<i64: 8, 1>}, {transform_indices = @transform_2, window_bounds = array<i64: 1, 1>}]} {
    %c0_i32 = arith.constant 0 : i32
    %0 = arith.cmpi eq, %arg0, %c0_i32 : i32
    %1 = arith.extui %0 : i1 to i32
    %c0_i32_0 = arith.constant 0 : i32
    %2 = arith.cmpi ne, %1, %c0_i32_0 : i32
    scf.if %2 {
      %cst_18 = arith.constant 0.000000e+00 : f32
      %c0_19 = arith.constant 0 : index
      %c0_20 = arith.constant 0 : index
      %39 = memref.load %arg3[%c0_19, %c0_20] : memref<1x1xf32, #tpu.memory_space<smem>>
      memref.store %cst_18, %arg3[%c0_19, %c0_20] : memref<1x1xf32, #tpu.memory_space<smem>>
    } else {
    }
    %c0 = arith.constant 0 : index
    %c0_1 = arith.constant 0 : index
    %3 = vector.load %arg1[%c0, %c0_1] : memref<8x10xf32, #tpu.memory_space<vmem>>, vector<8x10xf32>
    %c0_2 = arith.constant 0 : index
    %c0_3 = arith.constant 0 : index
    %4 = vector.load %arg2[%c0_2, %c0_3] : memref<8x1xi32, #tpu.memory_space<vmem>>, vector<8x1xi32>
    %5 = tpu.iota {dimensions = array<i32: 1>} : vector<8x10xi32>
    %6 = tpu.iota {dimensions = array<i32: 0>} : vector<8x10xi32>
    %7 = vector.broadcast %4 : vector<8x1xi32> to vector<8x10xi32>
    %8 = arith.cmpi eq, %5, %7 : vector<8x10xi32>
    %cst = arith.constant 0.000000e+00 : f32
    %9 = vector.broadcast %cst : f32 to vector<8x10xf32>
    %10 = arith.select %8, %3, %9 : vector<8x10xi1>, vector<8x10xf32>
    %cst_4 = arith.constant dense<0.000000e+00> : vector<8xf32>
    %11 = vector.multi_reduction <add>, %10, %cst_4 [1] : vector<8x10xf32> to vector<8xf32>
    %12 = vector.shape_cast %11 : vector<8xf32> to vector<8x1xf32>
    %13 = vector.broadcast %12 : vector<8x1xf32> to vector<8x10xf32>
    %14 = arith.subf %3, %13 : vector<8x10xf32>
    %cst_5 = arith.constant 1.000000e+00 : f32
    %15 = vector.broadcast %cst_5 : f32 to vector<8x10xf32>
    %16 = arith.addf %14, %15 : vector<8x10xf32>
    %cst_6 = arith.constant 0.000000e+00 : f32
    %17 = vector.broadcast %cst_6 : f32 to vector<8x10xf32>
    %18 = arith.maximumf %16, %17 : vector<8x10xf32>
    %c8_i32 = arith.constant 8 : i32
    %19 = arith.muli %arg0, %c8_i32 : i32
    %c8_i32_7 = arith.constant 8 : i32
    %20 = arith.subi %c8_i32_7, %19 : i32
    %c8_i32_8 = arith.constant 8 : i32
    %21 = arith.minsi %c8_i32_8, %20 : i32
    %22 = vector.broadcast %21 : i32 to vector<8x10xi32>
    %23 = arith.cmpi slt, %6, %22 : vector<8x10xi32>
    %cst_9 = arith.constant 0.000000e+00 : f32
    %24 = vector.broadcast %cst_9 : f32 to vector<8x10xf32>
    %25 = arith.select %23, %18, %24 : vector<8x10xi1>, vector<8x10xf32>
    %26 = vector.shape_cast %25 : vector<8x10xf32> to vector<1x8x10xf32>
    %cst_10 = arith.constant dense<0.000000e+00> : vector<1xf32>
    %27 = vector.multi_reduction <add>, %26, %cst_10 [1, 2] : vector<1x8x10xf32> to vector<1xf32>
    %28 = vector.shape_cast %27 : vector<1xf32> to vector<1x1x1xf32>
    %29 = vector.extract %28[0, 0, 0] : f32 from vector<1x1x1xf32>
    %30 = arith.sitofp %21 : i32 to f32
    %cst_11 = arith.constant 1.000000e+00 : f32
    %31 = arith.mulf %cst_11, %30 : f32
    %32 = arith.subf %29, %31 : f32
    %c0_12 = arith.constant 0 : index
    %c0_13 = arith.constant 0 : index
    %33 = memref.load %arg3[%c0_12, %c0_13] : memref<1x1xf32, #tpu.memory_space<smem>>
    %34 = arith.addf %33, %32 : f32
    %c0_14 = arith.constant 0 : index
    %c0_15 = arith.constant 0 : index
    %35 = memref.load %arg3[%c0_14, %c0_15] : memref<1x1xf32, #tpu.memory_space<smem>>
    memref.store %34, %arg3[%c0_14, %c0_15] : memref<1x1xf32, #tpu.memory_space<smem>>
    %c0_i32_16 = arith.constant 0 : i32
    %36 = arith.cmpi eq, %arg0, %c0_i32_16 : i32
    %37 = arith.extui %36 : i1 to i32
    %c0_i32_17 = arith.constant 0 : i32
    %38 = arith.cmpi ne, %37, %c0_i32_17 : i32
    scf.if %38 {
      %c0_18 = arith.constant 0 : index
      %c0_19 = arith.constant 0 : index
      %39 = memref.load %arg3[%c0_18, %c0_19] : memref<1x1xf32, #tpu.memory_space<smem>>
      %cst_20 = arith.constant 1.250000e-01 : f32
      %40 = arith.mulf %39, %cst_20 : f32
      %c0_21 = arith.constant 0 : index
      %c0_22 = arith.constant 0 : index
      %41 = memref.load %arg3[%c0_21, %c0_22] : memref<1x1xf32, #tpu.memory_space<smem>>
      memref.store %40, %arg3[%c0_21, %c0_22] : memref<1x1xf32, #tpu.memory_space<smem>>
    } else {
    }
    return
  }
  func.func @transform_0(%arg0: i32) -> (i32, i32) {
    %c0_i32 = arith.constant 0 : i32
    %c0_i32_0 = arith.constant 0 : i32
    return %arg0, %c0_i32 : i32, i32
  }
  func.func @transform_1(%arg0: i32) -> (i32, i32) {
    %c0_i32 = arith.constant 0 : i32
    %c0_i32_0 = arith.constant 0 : i32
    return %arg0, %c0_i32 : i32, i32
  }
  func.func @transform_2(%arg0: i32) -> (i32, i32) {
    %c0_i32 = arith.constant 0 : i32
    %c0_i32_0 = arith.constant 0 : i32
    %c0_i32_1 = arith.constant 0 : i32
    return %c0_i32, %c0_i32_0 : i32, i32
  }
}

</mosaic_0001>

<bundles_post_ra>
// kernel: tpu_custom_call.1
= control target key start
LH: loop header
LB: loop body
LE: loop exit
PB: predicated region body
PF: predicated region fallthrough
CT: control target
= control target key end

     0   :  { %s121_s0 = inlined_call_operand.vmem [shape: f32[8,10], index: 0, kind: input, shape index: {}]   ;;  %s122_s1 = inlined_call_operand.vmem [shape: s32[8,1], index: 1, kind: input, shape index: {}]   ;;  %s123_s2 = inlined_call_operand.hbm [shape: f32[1,1], index: 2, kind: output, shape index: {}]  }
   0x1   :  { %v19_v0 = vld [vmem:[%s122_s1] sm:$0xff] }
   0x2   :  { %7 = vsyncpa [#allocation3], 0  ;;  %v95_v1 = vmov 0   ;;  %v20_v2 = vlaneseq  ;;  %v18_v4 = vld [vmem:[%s121_s0] sm:$0xff]  ;;  %vm29_vm0 = vcmask 80896   ;;  %s96_s14 = smov [#allocation2]  }
   0x3   :  { %84 = vset.pattern.permute.xlu0 %v95_v1 }
   0x4   :  { %25 = vperm.xlu0 %84, %v19_v0   ;;  %v21_v3 = vand.u32 127, %v20_v2 }
  0x7f   :  { %v26_v5 = vpop.permute.xlu0 %25 }
  0x80   :  { %vm27_vm1 = vcmp.eq.s32.totalorder %v21_v3, %v26_v5 }
  0x81   :  { %v28_v6 = vsel %vm27_vm1, %v18_v4, 0.0 }
  0x82   :  { %v30_v7 = vsel %vm29_vm0, %v28_v6, 0.0 }
  0x83   :  { %31 = vadd.xlane.f32.xlu0 %v30_v7 }
 0x10c   :  { %v32_v8 = vpop.xlane.xlu0 %31 }
 0x10d   :  { %v33_v9 = vsub.f32 %v18_v4, %v32_v8 }
 0x10f   :  { %v34_v10 = vadd.f32 1.0, %v33_v9 }
 0x111   :  { %v35_v11 = vmax.f32 %v34_v10, 0.0 }
 0x113   :  { %v43_v12 = vsel %vm29_vm0, %v35_v11, 0.0 }
 0x114   :  { %44 = vadd.xlane.f32.xlu1 %v43_v12 }
 0x19d   :  { %v45_v13 = vpop.xlane.xlu1 %44 }
 0x19e   :  { %v46_v14 = vrot.slane %v45_v13, 4 }
 0x1a0   :  { %v47_v15 = vadd.f32 %v46_v14, %v45_v13 }
 0x1a2   :  { %v48_v16 = vrot.slane %v47_v15, 2 }
 0x1a4   :  { %v49_v17 = vadd.f32 %v48_v16, %v47_v15 }
 0x1a6   :  { %v50_v18 = vrot.slane %v49_v17, 1 }
 0x1a8   :  { %v51_v19 = vadd.f32 %v50_v18, %v49_v17 }
 0x1aa   :  { %79 = vpush %v51_v19 }
 0x1db   :  { %s80_s0 = spop %79 }
 0x1dc   :  { %s78_s1 = sadd.f32 -8.0, %s80_s0 }
 0x1de   :  { %s63_s13 = smul.f32 0.125, %s78_s1 }
 0x1e0   :  { %64 = sst [smem:[#allocation2]] %s63_s13 }
 0x1e1   :  { %72 = dma.smem_to_hbm %s96_s14, 16, %s123_s2, [#allocation3]  }
 0x1e2   :  { %93 = dma.done.wait [#allocation3], 16  }
 0x1e3   :  { %94 = vsyncadd [#allocation3], 4294967280 }
 0x1e4   :  { %76 = sfence }
 0x1e5   :  { %77 = vsyncpa [#allocation3], 1 }

</bundles_post_ra>
